<compile_context>
chip_gen: v6e
topology: v6e:2x2x1
jax: 0.10.0
libtpu: 0.0.40
codegen_flags: <defaults>
</compile_context>

<pallas_src>
import functools
import math

import jax
import jax.numpy as jnp
from jax.experimental import pallas as pl
from jax.experimental.pallas import tpu as pltpu


def _round_up(x: int, m: int) -> int:
    return ((x + m - 1) // m) * m


def _cdiv(a: int, b: int) -> int:
    return -(-a // b)


def _lshr32(x, k: int):
    # Logical right shift for int32 values (>> on int32 is arithmetic).
    return jnp.bitwise_and(x >> k, (1 << (32 - k)) - 1)


# ----------------------------------------------------------------------------
# Kernel
# ----------------------------------------------------------------------------
def _mlp_kernel(seed_ref, x_ref, *refs, num_layers, apply_dropout, drop_threshold,
                drop_scale, act, out_valid, out_padded):
    o_ref = refs[-1]
    wb = refs[:-1]  # (w0, b0, w1, b1, ...); weights already transposed to (in_p, out_p)

    h = x_ref[...]  # (TM, d0_p), native dtype
    acc = None
    for li in range(num_layers):
        w = wb[2 * li][...]       # (d_in_p, d_out_p)
        b = wb[2 * li + 1][...]   # (1, d_out_p), f32
        hh = h if h.dtype == w.dtype else h.astype(w.dtype)
        # Plain last-dim x first-dim contraction (weights pre-transposed in the
        # wrapper, once, outside the tile loop). f32 accumulation on the MXU.
        acc = jnp.dot(hh, w, preferred_element_type=jnp.float32) + b
        if li < num_layers - 1:
            h = acc.astype(x_ref.dtype)
    y = acc  # (TM, dL_p), f32

    # Dropout AFTER the full linear chain, BEFORE the activation (matches module).
    if apply_dropout:
        # Counter-based hash PRNG (murmur3-style fmix), all int32 ops: portable
        # across Mosaic and interpret mode. The mask is fully determined by
        # (seed, element position) -- callers must vary `seed` per training step.
        shape = y.shape
        rows = jax.lax.broadcasted_iota(jnp.int32, shape, 0)
        cols = jax.lax.broadcasted_iota(jnp.int32, shape, 1)
        h32 = rows * shape[1] + cols
        h32 = h32 + pl.program_id(0) * (shape[0] * shape[1])     # unique across tiles
        h32 = h32 * jnp.int32(-1640531527) + seed_ref[0]          # 0x9E3779B9
        h32 = jnp.bitwise_xor(h32, _lshr32(h32, 16)) * jnp.int32(-2048144789)  # 0x85EBCA6B
        h32 = jnp.bitwise_xor(h32, _lshr32(h32, 13)) * jnp.int32(-1028477387)  # 0xC2B2AE35
        h32 = jnp.bitwise_xor(h32, _lshr32(h32, 16))
        r24 = jnp.bitwise_and(h32, (1 << 24) - 1)                 # uniform in [0, 2^24)
        keep = r24 >= drop_threshold                              # int compare, no f32 convert
        y = jnp.where(keep, y * jnp.float32(drop_scale), 0.0)     # inverted dropout

    if act == "relu":
        y = jnp.maximum(y, 0.0)
    elif act == "sigmoid":
        y = jax.nn.sigmoid(y)
    elif act == "tanh":
        y = jnp.tanh(y)
    elif act == "softmax":
        # nn.Softmax(2): feature dim is the last axis for rank-3 inputs (and
        # rank-2-compatible). Padded lanes are masked out of the normalization.
        # TODO(synk): rank>=4 inputs where dim 2 is not the last axis are not handled.
        if out_valid < out_padded:
            lane = jax.lax.broadcasted_iota(jnp.int32, y.shape, dimension=1)
            y = jnp.where(lane < out_valid, y, -jnp.inf)
        y = jax.nn.softmax(y, axis=-1)
    else:
        raise TypeError(f"Not supported act type {act}")

    o_ref[...] = y.astype(o_ref.dtype)


# ----------------------------------------------------------------------------
# Parameter preparation (pad + transpose ONCE, reuse across calls)
# ----------------------------------------------------------------------------
def prepare_mlp_params(weights, biases=None, *, matmul_dtype=None):
    """weights[i]: (dims[i+1], dims[i]) PyTorch nn.Linear layout; biases[i]: (dims[i+1],) or None."""
    num_layers = len(weights)
    assert num_layers >= 1, "MLP needs at least one Linear layer"
    if biases is None:
        biases = [None] * num_layers
    assert len(biases) == num_layers

    dims = [int(weights[0].shape[1])] + [int(w.shape[0]) for w in weights]
    for li in range(num_layers):
        assert tuple(weights[li].shape) == (dims[li + 1], dims[li]), "layer dim mismatch"
    dims_p = [_round_up(d, 128) for d in dims]     # lane-dense feature dims

    wts, bs = [], []
    for li in range(num_layers):
        w = weights[li]
        if matmul_dtype is not None:
            w = w.astype(matmul_dtype)
        do, di = w.shape
        do_p, di_p = dims_p[li + 1], dims_p[li]
        wt = w.T                                   # (in, out): MXU-friendly, transposed once here
        if (di_p, do_p) != (di, do):
            wt = jnp.zeros((di_p, do_p), wt.dtype).at[:di, :do].set(wt)
        b = biases[li]
        if b is None:
            bp = jnp.zeros((1, do_p), jnp.float32)
        elif do_p == do:
            bp = b.astype(jnp.float32).reshape(1, do)
        else:
            bp = jnp.zeros((1, do_p), jnp.float32).at[0, :do].set(b.astype(jnp.float32))
        wts.append(wt)
        bs.append(bp)
    return {"weights": wts, "biases": bs, "dims": dims, "dims_p": dims_p}


# ----------------------------------------------------------------------------
# Forward wrapper
# ----------------------------------------------------------------------------
def mlp_forward(x, weights=None, biases=None, *, params=None, dropout=0.0, act="relu",
                training=False, seed=0, row_tile=1024, use_bf16_matmul=False):
    """Pallas implementation of MLP.forward(x)."""
    if params is None:
        mm_dtype = jnp.bfloat16 if (use_bf16_matmul and x.dtype == jnp.float32) else None
        params = prepare_mlp_params(weights, biases, matmul_dtype=mm_dtype)
    wts, bs = params["weights"], params["biases"]
    dims, dims_p = params["dims"], params["dims_p"]
    num_layers = len(wts)
    d_in, d_out = dims[0], dims[-1]
    assert x.shape[-1] == d_in, "input feature dim mismatch"

    orig_shape = x.shape
    M = int(math.prod(orig_shape[:-1])) if len(orig_shape) > 1 else 1
    x2 = x.reshape(M, d_in)

    # Row tiling: sublane-multiple for the dtype; >=2 tiles on large inputs (2 TCs on v7x).
    itemsize = jnp.dtype(x.dtype).itemsize
    sub = {1: 32, 2: 16}.get(itemsize, 8)
    n_tiles = _cdiv(M, row_tile)
    if M >= 1024:
        n_tiles = max(n_tiles, 2)
    tm = min(_round_up(_cdiv(M, n_tiles), sub), _round_up(row_tile, sub))
    m_pad = _round_up(M, tm)

    # Skip the extra HBM pad pass when x is already aligned.
    if m_pad == M and dims_p[0] == d_in:
        x_p = x2
    else:
        x_p = jnp.zeros((m_pad, dims_p[0]), x.dtype).at[:M, :d_in].set(x2)

    ins = [x_p]
    in_specs = [pl.BlockSpec((tm, dims_p[0]), lambda i, s: (i, 0))]
    for li in range(num_layers):
        ins += [wts[li], bs[li]]
        # Grid-invariant (resident) blocks: single buffer, no pointless double-buffering.
        in_specs += [
            pl.BlockSpec(tuple(wts[li].shape), lambda i, s: (0, 0),
                         pipeline_mode=pl.Buffered(1)),
            pl.BlockSpec(tuple(bs[li].shape), lambda i, s: (0, 0),
                         pipeline_mode=pl.Buffered(1)),
        ]

    p = float(dropout)
    apply_dropout = bool(training) and p > 0.0
    drop_threshold = min(int(round(p * (1 << 24))), 1 << 24)      # keep iff bits >= threshold
    drop_scale = (1.0 / (1.0 - p)) if p < 1.0 else 0.0

    kernel = functools.partial(
        _mlp_kernel,
        num_layers=num_layers,
        apply_dropout=apply_dropout,
        drop_threshold=drop_threshold,
        drop_scale=drop_scale,
        act=act,
        out_valid=d_out,
        out_padded=dims_p[-1],
    )

    # Explicit VMEM budget: resident weights/biases (single-buffered) + double-buffered
    # x/out tiles + f32 epilogue headroom.  Capped at 64 MiB so it also fits v7x.
    w_bytes = sum(int(w.size) * jnp.dtype(w.dtype).itemsize for w in wts)
    b_bytes = sum(int(b.size) * 4 for b in bs)
    io_bytes = 2 * tm * (dims_p[0] + dims_p[-1]) * itemsize
    scratch_bytes = 4 * tm * max(dims_p) * 4
    vmem_limit = int(max(min(w_bytes + b_bytes + io_bytes + scratch_bytes + (2 << 20),
                             64 << 20), 32 << 20))

    flops = 2 * M * sum(dims[i] * dims[i + 1] for i in range(num_layers))
    transcendentals = M * d_out if act in ("sigmoid", "tanh", "softmax") else 0
    bytes_accessed = (M * d_in + M * d_out) * itemsize + w_bytes + b_bytes

    out = pl.pallas_call(
        kernel,
        out_shape=jax.ShapeDtypeStruct((m_pad, dims_p[-1]), x.dtype),
        grid_spec=pltpu.PrefetchScalarGridSpec(
            num_scalar_prefetch=1,            # dropout seed lives in SMEM
            grid=(m_pad // tm,),
            in_specs=in_specs,
            out_specs=pl.BlockSpec((tm, dims_p[-1]), lambda i, s: (i, 0)),
        ),
        compiler_params=pltpu.CompilerParams(
            dimension_semantics=("parallel",),
            vmem_limit_bytes=vmem_limit,
        ),
        cost_estimate=pl.CostEstimate(flops=flops, transcendentals=transcendentals,
                                      bytes_accessed=bytes_accessed),
    )(jnp.array([seed], jnp.int32), *ins)

    if m_pad != M or dims_p[-1] != d_out:
        out = out[:M, :d_out]
    return out.reshape(orig_shape[:-1] + (d_out,))


# ---- pure-JAX reference for correctness checking (eval mode: dropout no-op) ----
def _mlp_ref(x, weights, biases, *, act="relu"):
    h = x.astype(jnp.float32)
    for w, b in zip(weights, biases):
        h = h @ w.astype(jnp.float32).T + b.astype(jnp.float32)
    if act == "relu":
        h = jnp.maximum(h, 0.0)
    elif act == "sigmoid":
        h = jax.nn.sigmoid(h)
    elif act == "tanh":
        h = jnp.tanh(h)
    elif act == "softmax":
        h = jax.nn.softmax(h, axis=-1)
    return h.astype(x.dtype)


if __name__ == "__main__":
    key = jax.random.PRNGKey(0)
    dims = [32, 64, 16]          # MLP(dims=[32, 64, 16], dropout=0.1)
    B, S = 2, 8
    keys = jax.random.split(key, 2 * (len(dims) - 1) + 1)

    x = jax.random.normal(keys[0], (B, S, dims[0]), dtype=jnp.float32)

    # xavier_uniform_ weights; small random biases to exercise the bias-add path.
    weights, biases = [], []
    for li in range(len(dims) - 1):
        fan_in, fan_out = dims[li], dims[li + 1]
        limit = math.sqrt(6.0 / (fan_in + fan_out))
        w = jax.random.uniform(keys[1 + 2 * li], (fan_out, fan_in),
                               minval=-limit, maxval=limit, dtype=jnp.float32)
        b = jax.random.uniform(keys[2 + 2 * li], (fan_out,),
                               minval=-0.1, maxval=0.1, dtype=jnp.float32)
        weights.append(w)
        biases.append(b)

    # Pad/transpose parameters once, reuse across calls (avoids per-call re-pad).
    params = prepare_mlp_params(weights, biases)

    # 1) Eval mode (dropout no-op), relu activation, 3-D input.
    out = mlp_forward(x, params=params, dropout=0.1, act="relu", training=False)
    jax.block_until_ready(out)
    assert out.shape == (B, S, dims[-1])
    ref = _mlp_ref(x, weights, biases, act="relu")
    assert jnp.allclose(out, ref, atol=2e-3, rtol=2e-3), float(jnp.max(jnp.abs(out - ref)))

    # 2) tanh activation, 2-D input.
    x2d = x.reshape(B * S, dims[0])
    out_t = mlp_forward(x2d, weights, biases, dropout=0.0, act="tanh", training=False)
    jax.block_until_ready(out_t)
    assert out_t.shape == (B * S, dims[-1])
    ref_t = _mlp_ref(x2d, weights, biases, act="tanh")
    assert jnp.allclose(out_t, ref_t, atol=2e-3, rtol=2e-3)

    # 3) softmax (nn.Softmax(2) on rank-3 input == last-axis softmax); padded lanes masked.
    out_s = mlp_forward(x, params=params, dropout=0.0, act="softmax", training=False)
    jax.block_until_ready(out_s)
    ref_s = _mlp_ref(x, weights, biases, act="softmax")
    assert jnp.allclose(out_s, ref_s, atol=2e-3, rtol=2e-3)

    # 4) Training-mode dropout (p=0.5) + relu. Kept elements must equal 2x the
    #    eval-mode relu output; some positives must be dropped and some kept.
    out_d = mlp_forward(x, params=params, dropout=0.5, act="relu", training=True, seed=123)
    jax.block_until_ready(out_d)
    assert out_d.shape == (B, S, dims[-1])
    assert bool(jnp.all(jnp.isfinite(out_d)))
    nz = out_d != 0
    assert jnp.allclose(jnp.where(nz, out_d, 0.0), jnp.where(nz, 2.0 * ref, 0.0),
                        atol=2e-3, rtol=2e-3)
    dropped = jnp.logical_and(ref > 1e-6, out_d == 0)
    kept = jnp.logical_and(ref > 1e-6, out_d != 0)
    assert bool(jnp.any(dropped)) and bool(jnp.any(kept))

    # 5) Optional bf16-operand matmul path (f32 accumulate), looser tolerance.
    out_bf = mlp_forward(x, weights, biases, dropout=0.0, act="relu",
                         training=False, use_bf16_matmul=True)
    jax.block_until_ready(out_bf)
    assert jnp.allclose(out_bf, ref, atol=1e-1, rtol=1e-1)

    print("KERNEL_OK")
</pallas_src>

<mosaic_0001>
module attributes {stable_mosaic.version = 11 : i64} {
  func.func @_mlp_kernel(%arg0: i32, %arg1: memref<1xi32, #tpu.memory_space<smem>>, %arg2: memref<16x128xf32, #tpu.memory_space<vmem>>, %arg3: memref<128x128xf32, #tpu.memory_space<vmem>>, %arg4: memref<1x128xf32, #tpu.memory_space<vmem>>, %arg5: memref<128x128xf32, #tpu.memory_space<vmem>>, %arg6: memref<1x128xf32, #tpu.memory_space<vmem>>, %arg7: memref<16x128xf32, #tpu.memory_space<vmem>>) attributes {dimension_semantics = [#tpu.dimension_semantics<parallel>], iteration_bounds = array<i64: 1>, scalar_prefetch = 1 : i64, scratch_operands = 0 : i64, tpu.core_type = #tpu.core_type<tc>, window_params = [{transform_indices = @transform_0, window_bounds = array<i64: 16, 128>}, {pipeline_mode = #tpu.pipeline_mode<synchronous>, transform_indices = @transform_1, window_bounds = array<i64: 128, 128>}, {pipeline_mode = #tpu.pipeline_mode<synchronous>, transform_indices = @transform_2, window_bounds = array<i64: 1, 128>}, {pipeline_mode = #tpu.pipeline_mode<synchronous>, transform_indices = @transform_3, window_bounds = array<i64: 128, 128>}, {pipeline_mode = #tpu.pipeline_mode<synchronous>, transform_indices = @transform_4, window_bounds = array<i64: 1, 128>}, {transform_indices = @transform_5, window_bounds = array<i64: 16, 128>}]} {
    %c0 = arith.constant 0 : index
    %c0_0 = arith.constant 0 : index
    %0 = vector.load %arg2[%c0, %c0_0] : memref<16x128xf32, #tpu.memory_space<vmem>>, vector<16x128xf32>
    %c0_1 = arith.constant 0 : index
    %c0_2 = arith.constant 0 : index
    %1 = vector.load %arg3[%c0_1, %c0_2] : memref<128x128xf32, #tpu.memory_space<vmem>>, vector<128x128xf32>
    %c0_3 = arith.constant 0 : index
    %c0_4 = arith.constant 0 : index
    %2 = vector.load %arg4[%c0_3, %c0_4] : memref<1x128xf32, #tpu.memory_space<vmem>>, vector<1x128xf32>
    %cst = arith.constant dense<0.000000e+00> : vector<16x128xf32>
    %3 = tpu.matmul %0, %1, %cst {dimension_numbers = #tpu.dot_dimension_numbers<[1], [0], [0], [1], [0, 0, 1, 1], [], []>} : vector<16x128xf32>, vector<128x128xf32>, vector<16x128xf32> -> vector<16x128xf32>
    %4 = vector.broadcast %2 : vector<1x128xf32> to vector<16x128xf32>
    %5 = arith.addf %3, %4 : vector<16x128xf32>
    %c0_5 = arith.constant 0 : index
    %c0_6 = arith.constant 0 : index
    %6 = vector.load %arg5[%c0_5, %c0_6] : memref<128x128xf32, #tpu.memory_space<vmem>>, vector<128x128xf32>
    %c0_7 = arith.constant 0 : index
    %c0_8 = arith.constant 0 : index
    %7 = vector.load %arg6[%c0_7, %c0_8] : memref<1x128xf32, #tpu.memory_space<vmem>>, vector<1x128xf32>
    %cst_9 = arith.constant dense<0.000000e+00> : vector<16x128xf32>
    %8 = tpu.matmul %5, %6, %cst_9 {dimension_numbers = #tpu.dot_dimension_numbers<[1], [0], [0], [1], [0, 0, 1, 1], [], []>} : vector<16x128xf32>, vector<128x128xf32>, vector<16x128xf32> -> vector<16x128xf32>
    %9 = vector.broadcast %7 : vector<1x128xf32> to vector<16x128xf32>
    %10 = arith.addf %8, %9 : vector<16x128xf32>
    %cst_10 = arith.constant 0.000000e+00 : f32
    %11 = vector.broadcast %cst_10 : f32 to vector<16x128xf32>
    %12 = arith.maximumf %10, %11 : vector<16x128xf32>
    %c0_11 = arith.constant 0 : index
    %c0_12 = arith.constant 0 : index
    %13 = vector.load %arg7[%c0_11, %c0_12] : memref<16x128xf32, #tpu.memory_space<vmem>>, vector<16x128xf32>
    tpu.vector_store %arg7[%c0_11, %c0_12], %12 {strides = array<i32>} : memref<16x128xf32, #tpu.memory_space<vmem>>, vector<16x128xf32>,
    return
  }
  func.func @transform_0(%arg0: i32, %arg1: memref<1xi32, #tpu.memory_space<smem>>) -> (i32, i32) {
    %c0_i32 = arith.constant 0 : i32
    %c0_i32_0 = arith.constant 0 : i32
    return %arg0, %c0_i32 : i32, i32
  }
  func.func @transform_1(%arg0: i32, %arg1: memref<1xi32, #tpu.memory_space<smem>>) -> (i32, i32) {
    %c0_i32 = arith.constant 0 : i32
    %c0_i32_0 = arith.constant 0 : i32
    %c0_i32_1 = arith.constant 0 : i32
    return %c0_i32, %c0_i32_0 : i32, i32
  }
  func.func @transform_2(%arg0: i32, %arg1: memref<1xi32, #tpu.memory_space<smem>>) -> (i32, i32) {
    %c0_i32 = arith.constant 0 : i32
    %c0_i32_0 = arith.constant 0 : i32
    %c0_i32_1 = arith.constant 0 : i32
    return %c0_i32, %c0_i32_0 : i32, i32
  }
  func.func @transform_3(%arg0: i32, %arg1: memref<1xi32, #tpu.memory_space<smem>>) -> (i32, i32) {
    %c0_i32 = arith.constant 0 : i32
    %c0_i32_0 = arith.constant 0 : i32
    %c0_i32_1 = arith.constant 0 : i32
    return %c0_i32, %c0_i32_0 : i32, i32
  }
  func.func @transform_4(%arg0: i32, %arg1: memref<1xi32, #tpu.memory_space<smem>>) -> (i32, i32) {
    %c0_i32 = arith.constant 0 : i32
    %c0_i32_0 = arith.constant 0 : i32
    %c0_i32_1 = arith.constant 0 : i32
    return %c0_i32, %c0_i32_0 : i32, i32
  }
  func.func @transform_5(%arg0: i32, %arg1: memref<1xi32, #tpu.memory_space<smem>>) -> (i32, i32) {
    %c0_i32 = arith.constant 0 : i32
    %c0_i32_0 = arith.constant 0 : i32
    return %arg0, %c0_i32 : i32, i32
  }
}

</mosaic_0001>

<bundles_post_ra>
// kernel: tpu_custom_call.1
= control target key start
LH: loop header
LB: loop body
LE: loop exit
PB: predicated region body
PF: predicated region fallthrough
CT: control target
= control target key end

     0   :  { %12 = vsyncpa [#allocation5], 0  ;;  %s555_s0 = inlined_call_operand.<no memory space> [shape: s32[1], index: 0, kind: input, shape index: {}]   ;;  %s556_s1 = inlined_call_operand.hbm [shape: f32[16,128], index: 1, kind: input, shape index: {}]   ;;  %s557_s2 = inlined_call_operand.hbm [shape: f32[128,128], index: 2, kind: input, shape index: {}]   ;;  %s558_s3 = inlined_call_operand.vmem [shape: f32[1,128], index: 3, kind: input, shape index: {}]   ;;  %s559_s4 = inlined_call_operand.hbm [shape: f32[128,128], index: 4, kind: input, shape index: {}]   ;;  %s560_s5 = inlined_call_operand.vmem [shape: f32[1,128], index: 5, kind: input, shape index: {}]   ;;  %s561_s6 = inlined_call_operand.hbm [shape: f32[16,128], index: 6, kind: output, shape index: {}]  }
   0x1   :  { %13 = vsyncpa [#allocation8], 0 }
   0x2   :  { %14 = vsyncpa [#allocation6], 0  ;;  %s484_s0 = smov [#allocation7]   ;;  %s485_s22 = smov [#allocation4]  }
   0x3   :  { %s32_s21 = sshll.u32 %s484_s0, 4  ;;  %s20_s23 = sshll.u32 %s485_s22, 4  ;;  %s33_s21 = int_to_ptr.vmem [resolvable:$true] %s32_s21  ;;  %s21_s23 = int_to_ptr.vmem [resolvable:$true] %s20_s23 }
   0x4   :  { %s406_s24 = scalar_lea.vmem %s33_s21, 2048  ;;  %p411_p1 = scmp.lt.s32.totalorder %s33_s21, %s33_s21 }
   0x5   :  { %p407_p0 = scmp.ne.s32.totalorder %s33_s21, %s406_s24  ;;  %p412_p2 = scmp.lt.s32.totalorder %s406_s24, %s406_s24 }
   0x7   :  { %p413_p3 = por %p412_p2, %p411_p1 }
   0x9   :  { %p414_p4 = pnand %p413_p3, %p407_p0 }
   0xb   :  { %417 = shalt.err (!%p414_p4)
}
   0xc   :  { %s486_s25 = smov 128   ;;  %s487_s26 = smov 8  }
   0xd   :  { %38 = dma.hbm_to_vmem [thread:$0]  %s557_s2, 2048, %s33_s21, [#allocation8], %s486_s25, %s486_s25, %s487_s26  }
   0xe   :  { %s426_s29 = scalar_lea.vmem %s21_s23, 256  ;;  %p431_p6 = scmp.lt.s32.totalorder %s21_s23, %s21_s23 }
   0xf   :  { %p427_p5 = scmp.ne.s32.totalorder %s21_s23, %s426_s29  ;;  %p432_p7 = scmp.lt.s32.totalorder %s426_s29, %s426_s29 }
  0x11   :  { %p433_p8 = por %p432_p7, %p431_p6 }
  0x13   :  { %p434_p9 = pnand %p433_p8, %p427_p5 }
  0x15   :  { %437 = shalt.err (!%p434_p9)
}
  0x16   :  { %26 = dma.hbm_to_vmem [thread:$0]  %s556_s1, 256, %s21_s23, [#allocation5], %s486_s25, %s486_s25, %s487_s26  }
  0x17   :  { %s488_s8 = smov [#allocation9]  }
  0x18   :  { %s46_s9 = sshll.u32 %s488_s8, 4  ;;  %s47_s9 = int_to_ptr.vmem [resolvable:$true] %s46_s9 }
  0x19   :  { %s446_s10 = scalar_lea.vmem %s47_s9, 2048  ;;  %p451_p11 = scmp.lt.s32.totalorder %s47_s9, %s47_s9 }
  0x1a   :  { %p447_p10 = scmp.ne.s32.totalorder %s47_s9, %s446_s10  ;;  %p452_p12 = scmp.lt.s32.totalorder %s446_s10, %s446_s10 }
  0x1c   :  { %p453_p13 = por %p452_p12, %p451_p11 }
  0x1e   :  { %p454_p0 = pnand %p453_p13, %p447_p10 }
  0x20   :  { %457 = shalt.err (!%p454_p0)
}
  0x21   :  { %52 = dma.hbm_to_vmem [thread:$0]  %s559_s4, 2048, %s47_s9, [#allocation8], %s486_s25, %s486_s25, %s487_s26  }
  0x22   :  { %478 = dma.done.wait [#allocation5], 256  }
  0x23   :  { %479 = vsyncadd [#allocation5], 4294967040 }
  0x24   :  { %480 = dma.done.wait [#allocation8], 4096  }
  0x25   :  { %481 = vsyncadd [#allocation8], 4294963200  ;;  %v81_v0 = vld [vmem:[#allocation7 + $0x78] sm:$0xff]  ;;  %v80_v1 = vld [vmem:[#allocation7 + $0x70] sm:$0xff]  ;;  %s489_s14 = smov [#allocation10]  }
  0x26   :  { %322 = vmatprep.subr.mxu0 %v81_v0  ;;  %v79_v2 = vld [vmem:[#allocation7 + $0x68] sm:$0xff]  ;;  %v78_v3 = vld [vmem:[#allocation7 + $0x60] sm:$0xff]  ;;  %v64_v4 = vld [vmem:[#allocation4] sm:$0xff]  ;;  %s271_s15 = sshll.u32 %s489_s14, 4  ;;  %s272_s15 = int_to_ptr.vmem [resolvable:$true] %s271_s15 }
  0x27   :  { %323 = vmatpush3.msra.mxu0 %v81_v0  ;;  %v77_v5 = vld [vmem:[#allocation7 + $0x58] sm:$0xff]  ;;  %354 = vmatprep.mubr.f32.mxu0 %v64_v4  ;;  %v178_v7 = vld [vmem:[#allocation9 + $0x70] sm:$0xff]  ;;  %v177_v9 = vld [vmem:[#allocation9 + $0x68] sm:$0xff]  ;;  %p463_p2 = scmp.lt.s32.totalorder %s272_s15, %s272_s15 }
  0x28   :  { %324 = vmatprep.subr.mxu0 %v80_v1  ;;  %v179_v6 = vld [vmem:[#allocation9 + $0x78] sm:$0xff]  ;;  %v76_v8 = vld [vmem:[#allocation7 + $0x50] sm:$0xff]  ;;  %v75_v10 = vld [vmem:[#allocation7 + $0x48] sm:$0xff] }
  0x29   :  { %325 = vmatpush3.msra.mxu0 %v80_v1  ;;  %357 = vmatprep.subr.mxu1 %v179_v6  ;;  %v176_v11 = vld [vmem:[#allocation9 + $0x60] sm:$0xff]  ;;  %v175_v13 = vld [vmem:[#allocation9 + $0x58] sm:$0xff]  ;;  %v174_v15 = vld [vmem:[#allocation9 + $0x50] sm:$0xff] }
  0x2a   :  { %326 = vmatprep.subr.mxu0 %v79_v2  ;;  %358 = vmatpush3.msra.mxu1 %v179_v6  ;;  %v74_v12 = vld [vmem:[#allocation7 + $0x40] sm:$0xff]  ;;  %v73_v14 = vld [vmem:[#allocation7 + $0x38] sm:$0xff]  ;;  %v72_v16 = vld [vmem:[#allocation7 + $0x30] sm:$0xff] }
  0x2b   :  { %327 = vmatpush3.msra.mxu0 %v79_v2  ;;  %359 = vmatprep.subr.mxu1 %v178_v7  ;;  %v173_v17 = vld [vmem:[#allocation9 + $0x48] sm:$0xff]  ;;  %v172_v19 = vld [vmem:[#allocation9 + $0x40] sm:$0xff]  ;;  %v171_v21 = vld [vmem:[#allocation9 + $0x38] sm:$0xff] }
  0x2c   :  { %328 = vmatprep.subr.mxu0 %v78_v3  ;;  %360 = vmatpush3.msra.mxu1 %v178_v7  ;;  %v71_v18 = vld [vmem:[#allocation7 + $0x28] sm:$0xff]  ;;  %v70_v20 = vld [vmem:[#allocation7 + $0x20] sm:$0xff]  ;;  %v69_v22 = vld [vmem:[#allocation7 + $0x18] sm:$0xff] }
  0x2d   :  { %329 = vmatpush3.msra.mxu0 %v78_v3  ;;  %361 = vmatprep.subr.mxu1 %v177_v9  ;;  %v170_v23 = vld [vmem:[#allocation9 + $0x30] sm:$0xff]  ;;  %v169_v25 = vld [vmem:[#allocation9 + $0x28] sm:$0xff]  ;;  %v168_v27 = vld [vmem:[#allocation9 + $0x20] sm:$0xff] }
  0x2e   :  { %330 = vmatprep.subr.mxu0 %v77_v5  ;;  %362 = vmatpush3.msra.mxu1 %v177_v9  ;;  %v68_v24 = vld [vmem:[#allocation7 + $0x10] sm:$0xff]  ;;  %v67_v26 = vld [vmem:[#allocation7 + $0x8] sm:$0xff]  ;;  %v66_v28 = vld [vmem:[#allocation7] sm:$0xff] }
  0x2f   :  { %331 = vmatpush3.msra.mxu0 %v77_v5  ;;  %363 = vmatprep.subr.mxu1 %v176_v11  ;;  %v167_v29 = vld [vmem:[#allocation9 + $0x18] sm:$0xff]  ;;  %v166_v31 = vld [vmem:[#allocation9 + $0x10] sm:$0xff]  ;;  %v165_v32 = vld [vmem:[#allocation9 + $0x8] sm:$0xff] }
  0x30   :  { %332 = vmatprep.subr.mxu0 %v76_v8  ;;  %364 = vmatpush3.msra.mxu1 %v176_v11  ;;  %v65_v30 = vld [vmem:[#allocation4 + $0x8] sm:$0xff]  ;;  %v164_v33 = vld [vmem:[#allocation9] sm:$0xff]  ;;  %v284_v35 = vld [vmem:[%s558_s3] ss:$0 sm:$0xff]  ;;  %s458_s3 = scalar_lea.vmem %s272_s15, 256 }
  0x31   :  { %333 = vmatpush3.msra.mxu0 %v76_v8  ;;  %365 = vmatprep.subr.mxu1 %v175_v13  ;;  %v285_v39 = vld [vmem:[%s560_s5] ss:$0 sm:$0xff]  ;;  %p459_p1 = scmp.ne.s32.totalorder %s272_s15, %s458_s3  ;;  %p464_p3 = scmp.lt.s32.totalorder %s458_s3, %s458_s3 }
  0x32   :  { %334 = vmatprep.subr.mxu0 %v75_v10  ;;  %366 = vmatpush3.msra.mxu1 %v175_v13 }
  0x33   :  { %335 = vmatpush3.msra.mxu0 %v75_v10  ;;  %367 = vmatprep.subr.mxu1 %v174_v15  ;;  %p465_p4 = por %p464_p3, %p463_p2 }
  0x34   :  { %336 = vmatprep.subr.mxu0 %v74_v12  ;;  %368 = vmatpush3.msra.mxu1 %v174_v15 }
  0x35   :  { %337 = vmatpush3.msra.mxu0 %v74_v12  ;;  %369 = vmatprep.subr.mxu1 %v173_v17  ;;  %p466_p5 = pnand %p465_p4, %p459_p1 }
  0x36   :  { %338 = vmatprep.subr.mxu0 %v73_v14  ;;  %370 = vmatpush3.msra.mxu1 %v173_v17 }
  0x37   :  { %339 = vmatpush3.msra.mxu0 %v73_v14  ;;  %371 = vmatprep.subr.mxu1 %v172_v19 }
  0x38   :  { %340 = vmatprep.subr.mxu0 %v72_v16  ;;  %372 = vmatpush3.msra.mxu1 %v172_v19 }
  0x39   :  { %341 = vmatpush3.msra.mxu0 %v72_v16  ;;  %373 = vmatprep.subr.mxu1 %v171_v21 }
  0x3a   :  { %342 = vmatprep.subr.mxu0 %v71_v18  ;;  %374 = vmatpush3.msra.mxu1 %v171_v21 }
  0x3b   :  { %343 = vmatpush3.msra.mxu0 %v71_v18  ;;  %375 = vmatprep.subr.mxu1 %v170_v23 }
  0x3c   :  { %344 = vmatprep.subr.mxu0 %v70_v20  ;;  %376 = vmatpush3.msra.mxu1 %v170_v23 }
  0x3d   :  { %345 = vmatpush3.msra.mxu0 %v70_v20  ;;  %377 = vmatprep.subr.mxu1 %v169_v25 }
  0x3e   :  { %346 = vmatprep.subr.mxu0 %v69_v22  ;;  %378 = vmatpush3.msra.mxu1 %v169_v25 }
  0x3f   :  { %347 = vmatpush3.msra.mxu0 %v69_v22  ;;  %379 = vmatprep.subr.mxu1 %v168_v27 }
  0x40   :  { %348 = vmatprep.subr.mxu0 %v68_v24  ;;  %380 = vmatpush3.msra.mxu1 %v168_v27 }
  0x41   :  { %349 = vmatpush3.msra.mxu0 %v68_v24  ;;  %381 = vmatprep.subr.mxu1 %v167_v29 }
  0x42   :  { %350 = vmatprep.subr.mxu0 %v67_v26  ;;  %382 = vmatpush3.msra.mxu1 %v167_v29 }
  0x43   :  { %351 = vmatpush3.msra.mxu0 %v67_v26  ;;  %383 = vmatprep.subr.mxu1 %v166_v31 }
  0x44   :  { %352 = vmatprep.subr.mxu0 %v66_v28  ;;  %384 = vmatpush3.msra.mxu1 %v166_v31 }
  0x45   :  { %353 = vmatpush3.msra.mxu0 %v66_v28  ;;  %385 = vmatprep.subr.mxu1 %v165_v32 }
  0x46   :  { %355 = vmatmul.mubr.f32.vlgmr.msra.gmra.mxu0 %v65_v30  ;;  %386 = vmatpush3.msra.mxu1 %v165_v32 }
  0x47   :  { %387 = vmatprep.subr.mxu1 %v164_v33 }
  0x48   :  { %388 = vmatpush3.msra.mxu1 %v164_v33 }
 0x106   :  { %v356_v34 = vpop.f32.mrf.mxu0 }
 0x107   :  { %v161_v38 = vadd.f32 %v356_v34, %v284_v35 }
 0x108   :  { %v155_v36 = vpop.f32.mrf.mxu0 }
 0x109   :  { %v156_v37 = vadd.f32 %v284_v35, %v155_v36 }
 0x10b   :  { %389 = vmatprep.mubr.f32.mxu1 %v156_v37 }
 0x10c   :  { %390 = vmatmul.mubr.f32.vlgmr.msra.gmra.mxu1 %v161_v38 }
 0x1cc   :  { %v391_v40 = vpop.f32.mrf.mxu1 }
 0x1cd   :  { %v259_v41 = vadd.f32 %v391_v40, %v285_v39 }
 0x1ce   :  { %v253_v42 = vpop.f32.mrf.mxu1 }
 0x1cf   :  { %v263_v43 = vmax.f32 %v259_v41, 0.0  ;;  %v254_v44 = vadd.f32 %v285_v39, %v253_v42 }
 0x1d1   :  { %265 = vst [vmem:[#allocation10 + $0x8] sm:$0xff] %v263_v43  ;;  %v262_v45 = vmax.f32 %v254_v44, 0.0 }
 0x1d3   :  { %264 = vst [vmem:[#allocation10] sm:$0xff] %v262_v45 }
 0x1d4   :  { %469 = shalt.err (!%p466_p5)
}
 0x1d5   :  { %277 = dma.vmem_to_hbm [thread:$0]  %s272_s15, 256, %s561_s6, [#allocation6], %s486_s25, %s486_s25, %s487_s26  }
 0x1d6   :  { %482 = dma.done.wait [#allocation6], 256  }
 0x1d7   :  { %483 = vsyncadd [#allocation6], 4294967040 }
 0x1d8   :  { %281 = vsyncpa [#allocation5], 1 }
 0x1d9   :  { %282 = vsyncpa [#allocation8], 1 }
 0x1da   :  { %283 = vsyncpa [#allocation6], 1 }

</bundles_post_ra>
